<compile_context>
chip_gen: v7x
topology: tpu7x:2x2x1
jax: 0.10.0
libtpu: 0.0.40
codegen_flags: <defaults>
</compile_context>

<pallas_src>
import functools

import jax
import jax.numpy as jnp
from jax.experimental import pallas as pl
from jax.experimental.pallas import tpu as pltpu


def _attention_kernel(x_ref, w1_ref, w2_ref, o_ref, acc_ref, *, inv_hw, inv_temp):
    # x_ref:   (TB, C, T)      VMEM  spatial tile of TB batch rows (lane-dense)
    # w1_ref:  (C, hidden)     VMEM  conv1 weight, pre-transposed in the wrapper
    # w2_ref:  (hidden, K)     VMEM  conv2 weight, pre-transposed in the wrapper
    # o_ref:   (TB, K)         VMEM  softmax output rows (resident across spatial steps)
    # acc_ref: (TB, C, 128)    VMEM  f32 lane-partial GAP accumulator (persists over grid)
    s = pl.program_id(1)

    @pl.when(s == 0)
    def _init():
        acc_ref[...] = jnp.zeros_like(acc_ref)

    # Lane-partial accumulation (pure VPU): fold the T lanes into 128 lanes using
    # static 128-wide slices of the ref. The cross-lane (XLU) reduce is deferred to
    # the finalize branch so the per-step work hides under the input DMA.
    nchunks = x_ref.shape[-1] // 128
    partial = x_ref[:, :, 0:128].astype(jnp.float32)
    for i in range(1, nchunks):
        partial = partial + x_ref[:, :, i * 128:(i + 1) * 128].astype(jnp.float32)
    acc_ref[...] += partial

    @pl.when(s == pl.num_programs(1) - 1)
    def _finalize():
        # Global average pool: one cross-lane reduce, then scale by the true 1/(H*W).
        gap = jnp.sum(acc_ref[...], axis=-1) * inv_hw                 # (TB, C)
        h = jnp.maximum(
            jnp.dot(gap, w1_ref[...], preferred_element_type=jnp.float32), 0.0)
        logits = jnp.dot(h, w2_ref[...],
                         preferred_element_type=jnp.float32) * inv_temp
        m = jnp.max(logits, axis=-1, keepdims=True)                   # stable softmax
        e = jnp.exp(logits - m)
        o_ref[...] = (e / jnp.sum(e, axis=-1, keepdims=True)).astype(o_ref.dtype)


def _tpu_gen_config():
    """Returns (per_step_byte_budget, scoped_vmem_default, vmem_limit_cap)."""
    kind = ""
    try:
        kind = jax.devices()[0].device_kind.lower()
    except Exception:
        pass
    if "v5 lite" in kind or "v5e" in kind or "v5lite" in kind:
        return (1 << 20, 16 << 20, 96 << 20)          # v5e
    if "7" in kind:
        return (3 << 20, 32 << 20, 40 << 20)          # v7x: 64 MiB physical VMEM per TC
    return (2 << 20, 32 << 20, 96 << 20)              # v6e / default


def _choose_tiles(B, C, HW, itemsize, budget_bytes, max_chunks=64,
                  spatial_tile=None, batch_block=None):
    """Pick (TB, T, hw_pad): batch block, spatial tile (multiple of 128), padded HW."""
    # ---- spatial tile T and padded spatial extent ----
    if spatial_tile is not None:
        assert spatial_tile % 128 == 0, "spatial_tile must be a multiple of 128"
        T = spatial_tile
        hw_pad = ((HW + T - 1) // T) * T
    else:
        hw128 = ((HW + 127) // 128) * 128
        t_cap = max(128, min(max_chunks * 128,
                             (budget_bytes // max(C * itemsize, 1) // 128) * 128))
        if hw128 <= t_cap:
            T, hw_pad = hw128, hw128
        else:
            n = hw128 // 128
            best = max(d for d in range(1, n + 1) if n % d == 0 and d * 128 <= t_cap)
            T, hw_pad = best * 128, hw128
            # Poor divisor structure (e.g. prime HW/128): pad a little further so each
            # step moves enough bytes to amortize overhead, but never >~12% extra bytes.
            if C * T * itemsize < (budget_bytes // 4):
                t_alt = t_cap
                hw_alt = ((HW + t_alt - 1) // t_alt) * t_alt
                if hw_alt <= hw128 + hw128 // 8:
                    T, hw_pad = t_alt, hw_alt
    # ---- batch block TB (divisor of B) filling the per-step byte budget ----
    if batch_block is not None:
        assert B % batch_block == 0, "batch_block must divide the batch size"
        TB = batch_block
    else:
        tb_cap = max(1, budget_bytes // max(C * T * itemsize, 1))
        TB = max(d for d in range(1, B + 1) if B % d == 0 and d <= tb_cap)
    return TB, T, hw_pad


def attention_forward(x, conv1_w, conv2_w, temperature=30.0,
                      spatial_tile=None, batch_block=None):
    B, C, H, W = x.shape
    HW = H * W
    hidden = conv1_w.shape[0]
    K = conv2_w.shape[0]

    budget, scoped_default, vmem_cap = _tpu_gen_config()

    # Lane-dense (B, C, HW) layout; keep the caller's dtype (bf16 halves HBM traffic).
    x3 = x.reshape(B, C, HW)
    itemsize = jnp.dtype(x3.dtype).itemsize

    TB, T, hw_pad = _choose_tiles(B, C, HW, itemsize, budget,
                                  spatial_tile=spatial_tile, batch_block=batch_block)
    if hw_pad != HW:
        # Zero padding does not change the spatial sum; the mean uses the true 1/HW.
        x3 = jnp.pad(x3, ((0, 0), (0, 0), (0, hw_pad - HW)))

    w1t = conv1_w.reshape(hidden, C).T.astype(jnp.float32)      # (C, hidden)
    w2t = conv2_w.reshape(K, hidden).T.astype(jnp.float32)      # (hidden, K)

    grid = (B // TB, hw_pad // T)

    kernel = functools.partial(
        _attention_kernel, inv_hw=1.0 / HW, inv_temp=1.0 / float(temperature))

    # VMEM budget estimate: double-buffered input tile + weights + output + scratch.
    need = (2 * TB * C * T * itemsize
            + 2 * 4 * (C * hidden + hidden * K)
            + 2 * TB * K * 4
            + TB * C * 128 * 4)
    params = {"dimension_semantics": ("parallel", "arbitrary")}
    if need > scoped_default:
        params["vmem_limit_bytes"] = int(min(max(need * 2, need + (4 << 20)), vmem_cap))
    compiler_params = pltpu.CompilerParams(**params)

    # TODO(synk): for B == 1 on v7x the batch "parallel" axis leaves one TensorCore idle;
    # a core-parallel split of the spatial reduction + partial-sum combine would recover it.

    return pl.pallas_call(
        kernel,
        out_shape=jax.ShapeDtypeStruct((B, K), jnp.float32),
        grid_spec=pltpu.PrefetchScalarGridSpec(
            num_scalar_prefetch=0,
            grid=grid,
            in_specs=[
                pl.BlockSpec((TB, C, T), lambda b, s: (b, 0, s)),
                pl.BlockSpec((C, hidden), lambda b, s: (0, 0)),
                pl.BlockSpec((hidden, K), lambda b, s: (0, 0)),
            ],
            out_specs=pl.BlockSpec((TB, K), lambda b, s: (b, 0)),
            scratch_shapes=[pltpu.VMEM((TB, C, 128), jnp.float32)],
        ),
        compiler_params=compiler_params,
    )(x3, w1t, w2t)


def attention_reference(x, conv1_w, conv2_w, temperature=30.0):
    # Pure-JAX reference of the PyTorch forward.
    hidden = conv1_w.shape[0]
    K = conv2_w.shape[0]
    att = jnp.mean(x, axis=(2, 3))                               # (B, C)
    h = jnp.maximum(att @ conv1_w.reshape(hidden, att.shape[1]).T, 0.0)
    logits = (h @ conv2_w.reshape(K, hidden).T) / temperature    # (B, K)
    return jax.nn.softmax(logits, axis=-1)


if __name__ == "__main__":
    key = jax.random.PRNGKey(0)
    kx, k1, k2, kx2 = jax.random.split(key, 4)

    # Attention(in_planes=16, ratio=4, K=4, temprature=30)
    B, C, H, W = 2, 16, 16, 16
    ratio, K = 4, 4
    hidden = C // ratio
    temperature = 30.0

    x = jax.random.normal(kx, (B, C, H, W), dtype=jnp.float32)
    # kaiming_normal_(mode='fan_out', nonlinearity='relu'): std = sqrt(2 / fan_out)
    conv1_w = jax.random.normal(k1, (hidden, C, 1, 1), jnp.float32) * (2.0 / hidden) ** 0.5
    conv2_w = jax.random.normal(k2, (K, hidden, 1, 1), jnp.float32) * (2.0 / K) ** 0.5

    ref = attention_reference(x, conv1_w, conv2_w, temperature)

    # 1) Default byte-budget tiling: collapses to a single grid step for this shape.
    out = jax.block_until_ready(attention_forward(x, conv1_w, conv2_w, temperature))
    assert out.shape == (B, K), out.shape
    assert jnp.allclose(out, ref, atol=1e-5, rtol=1e-5), (out, ref)
    assert jnp.allclose(jnp.sum(out, axis=-1), 1.0, atol=1e-5)

    # 2) Forced small tiles: exercises the multi-step accumulate / init / finalize path.
    out2 = jax.block_until_ready(
        attention_forward(x, conv1_w, conv2_w, temperature,
                          spatial_tile=128, batch_block=1))
    assert jnp.allclose(out2, ref, atol=1e-5, rtol=1e-5), (out2, ref)

    # 3) Unaligned spatial extent (H*W = 100 -> zero-padded to 128), bf16 activations.
    xb = jax.random.normal(kx2, (3, C, 10, 10), dtype=jnp.bfloat16)
    ref3 = attention_reference(xb.astype(jnp.float32), conv1_w, conv2_w, temperature)
    out3 = jax.block_until_ready(attention_forward(xb, conv1_w, conv2_w, temperature))
    assert out3.shape == (3, K), out3.shape
    assert jnp.allclose(out3, ref3, atol=1e-3, rtol=1e-3), (out3, ref3)

    print("KERNEL_OK")
</pallas_src>

<mosaic_0001>
module attributes {stable_mosaic.version = 11 : i64} {
  func.func @_attention_kernel(%arg0: i32, %arg1: i32, %arg2: memref<2x16x256xf32, #tpu.memory_space<vmem>>, %arg3: memref<16x4xf32, #tpu.memory_space<vmem>>, %arg4: memref<4x4xf32, #tpu.memory_space<vmem>>, %arg5: memref<2x4xf32, #tpu.memory_space<vmem>>, %arg6: memref<2x16x128xf32, #tpu.memory_space<vmem>>) attributes {dimension_semantics = [#tpu.dimension_semantics<parallel>, #tpu.dimension_semantics<arbitrary>], iteration_bounds = array<i64: 1, 1>, scalar_prefetch = 0 : i64, scratch_operands = 1 : i64, tpu.core_type = #tpu.core_type<tc>, window_params = [{transform_indices = @transform_0, window_bounds = array<i64: 2, 16, 256>}, {pipeline_mode = #tpu.pipeline_mode<synchronous>, transform_indices = @transform_1, window_bounds = array<i64: 16, 4>}, {pipeline_mode = #tpu.pipeline_mode<synchronous>, transform_indices = @transform_2, window_bounds = array<i64: 4, 4>}, {transform_indices = @transform_3, window_bounds = array<i64: 2, 4>}]} {
    %c0_i32 = arith.constant 0 : i32
    %0 = arith.cmpi eq, %arg1, %c0_i32 : i32
    %1 = arith.extui %0 : i1 to i32
    %c0_i32_0 = arith.constant 0 : i32
    %2 = arith.cmpi ne, %1, %c0_i32_0 : i32
    scf.if %2 {
      %cst = arith.constant 0.000000e+00 : f32
      %12 = vector.broadcast %cst : f32 to vector<2x16x128xf32>
      %c0_13 = arith.constant 0 : index
      %c0_14 = arith.constant 0 : index
      %c0_15 = arith.constant 0 : index
      %13 = vector.load %arg6[%c0_13, %c0_14, %c0_15] : memref<2x16x128xf32, #tpu.memory_space<vmem>>, vector<2x16x128xf32>
      tpu.vector_store %arg6[%c0_13, %c0_14, %c0_15], %12 {strides = array<i32>} : memref<2x16x128xf32, #tpu.memory_space<vmem>>, vector<2x16x128xf32>,
    } else {
    }
    %c0 = arith.constant 0 : index
    %c0_1 = arith.constant 0 : index
    %c0_2 = arith.constant 0 : index
    %3 = vector.load %arg2[%c0, %c0_1, %c0_2] : memref<2x16x256xf32, #tpu.memory_space<vmem>>, vector<2x16x128xf32>
    %c0_3 = arith.constant 0 : index
    %c0_4 = arith.constant 0 : index
    %c128 = arith.constant 128 : index
    %4 = vector.load %arg2[%c0_3, %c0_4, %c128] : memref<2x16x256xf32, #tpu.memory_space<vmem>>, vector<2x16x128xf32>
    %5 = arith.addf %3, %4 : vector<2x16x128xf32>
    %c0_5 = arith.constant 0 : index
    %c0_6 = arith.constant 0 : index
    %c0_7 = arith.constant 0 : index
    %6 = vector.load %arg6[%c0_5, %c0_6, %c0_7] : memref<2x16x128xf32, #tpu.memory_space<vmem>>, vector<2x16x128xf32>
    %7 = arith.addf %6, %5 : vector<2x16x128xf32>
    %c0_8 = arith.constant 0 : index
    %c0_9 = arith.constant 0 : index
    %c0_10 = arith.constant 0 : index
    %8 = vector.load %arg6[%c0_8, %c0_9, %c0_10] : memref<2x16x128xf32, #tpu.memory_space<vmem>>, vector<2x16x128xf32>
    tpu.vector_store %arg6[%c0_8, %c0_9, %c0_10], %7 {strides = array<i32>} : memref<2x16x128xf32, #tpu.memory_space<vmem>>, vector<2x16x128xf32>,
    %c0_i32_11 = arith.constant 0 : i32
    %9 = arith.cmpi eq, %arg1, %c0_i32_11 : i32
    %10 = arith.extui %9 : i1 to i32
    %c0_i32_12 = arith.constant 0 : i32
    %11 = arith.cmpi ne, %10, %c0_i32_12 : i32
    scf.if %11 {
      %c0_13 = arith.constant 0 : index
      %c0_14 = arith.constant 0 : index
      %c0_15 = arith.constant 0 : index
      %12 = vector.load %arg6[%c0_13, %c0_14, %c0_15] : memref<2x16x128xf32, #tpu.memory_space<vmem>>, vector<2x16x128xf32>
      %cst = arith.constant dense<0.000000e+00> : vector<2x16xf32>
      %13 = vector.multi_reduction <add>, %12, %cst [2] : vector<2x16x128xf32> to vector<2x16xf32>
      %cst_16 = arith.constant 3.906250e-03 : f32
      %14 = vector.broadcast %cst_16 : f32 to vector<2x16xf32>
      %15 = arith.mulf %13, %14 : vector<2x16xf32>
      %c0_17 = arith.constant 0 : index
      %c0_18 = arith.constant 0 : index
      %16 = vector.load %arg3[%c0_17, %c0_18] : memref<16x4xf32, #tpu.memory_space<vmem>>, vector<16x4xf32>
      %cst_19 = arith.constant dense<0.000000e+00> : vector<2x4xf32>
      %17 = tpu.matmul %15, %16, %cst_19 {dimension_numbers = #tpu.dot_dimension_numbers<[1], [0], [0], [1], [0, 0, 1, 1], [], []>} : vector<2x16xf32>, vector<16x4xf32>, vector<2x4xf32> -> vector<2x4xf32>
      %cst_20 = arith.constant 0.000000e+00 : f32
      %18 = vector.broadcast %cst_20 : f32 to vector<2x4xf32>
      %19 = arith.maximumf %17, %18 : vector<2x4xf32>
      %c0_21 = arith.constant 0 : index
      %c0_22 = arith.constant 0 : index
      %20 = vector.load %arg4[%c0_21, %c0_22] : memref<4x4xf32, #tpu.memory_space<vmem>>, vector<4x4xf32>
      %cst_23 = arith.constant dense<0.000000e+00> : vector<2x4xf32>
      %21 = tpu.matmul %19, %20, %cst_23 {dimension_numbers = #tpu.dot_dimension_numbers<[1], [0], [0], [1], [0, 0, 1, 1], [], []>} : vector<2x4xf32>, vector<4x4xf32>, vector<2x4xf32> -> vector<2x4xf32>
      %cst_24 = arith.constant 0.0333333351 : f32
      %22 = vector.broadcast %cst_24 : f32 to vector<2x4xf32>
      %23 = arith.mulf %21, %22 : vector<2x4xf32>
      %cst_25 = arith.constant dense<0xFF800000> : vector<2xf32>
      %24 = vector.multi_reduction <maximumf>, %23, %cst_25 [1] : vector<2x4xf32> to vector<2xf32>
      %25 = vector.shape_cast %24 : vector<2xf32> to vector<2x1xf32>
      %26 = vector.broadcast %25 : vector<2x1xf32> to vector<2x4xf32>
      %27 = arith.subf %23, %26 : vector<2x4xf32>
      %28 = math.exp %27 : vector<2x4xf32>
      %cst_26 = arith.constant dense<0.000000e+00> : vector<2xf32>
      %29 = vector.multi_reduction <add>, %28, %cst_26 [1] : vector<2x4xf32> to vector<2xf32>
      %30 = vector.shape_cast %29 : vector<2xf32> to vector<2x1xf32>
      %31 = vector.broadcast %30 : vector<2x1xf32> to vector<2x4xf32>
      %32 = arith.divf %28, %31 : vector<2x4xf32>
      %c0_27 = arith.constant 0 : index
      %c0_28 = arith.constant 0 : index
      %33 = vector.load %arg5[%c0_27, %c0_28] : memref<2x4xf32, #tpu.memory_space<vmem>>, vector<2x4xf32>
      tpu.vector_store %arg5[%c0_27, %c0_28], %32 {strides = array<i32>} : memref<2x4xf32, #tpu.memory_space<vmem>>, vector<2x4xf32>,
    } else {
    }
    return
  }
  func.func @transform_0(%arg0: i32, %arg1: i32) -> (i32, i32, i32) {
    %c0_i32 = arith.constant 0 : i32
    %c0_i32_0 = arith.constant 0 : i32
    return %arg0, %c0_i32, %arg1 : i32, i32, i32
  }
  func.func @transform_1(%arg0: i32, %arg1: i32) -> (i32, i32) {
    %c0_i32 = arith.constant 0 : i32
    %c0_i32_0 = arith.constant 0 : i32
    %c0_i32_1 = arith.constant 0 : i32
    return %c0_i32, %c0_i32_0 : i32, i32
  }
  func.func @transform_2(%arg0: i32, %arg1: i32) -> (i32, i32) {
    %c0_i32 = arith.constant 0 : i32
    %c0_i32_0 = arith.constant 0 : i32
    %c0_i32_1 = arith.constant 0 : i32
    return %c0_i32, %c0_i32_0 : i32, i32
  }
  func.func @transform_3(%arg0: i32, %arg1: i32) -> (i32, i32) {
    %c0_i32 = arith.constant 0 : i32
    %c0_i32_0 = arith.constant 0 : i32
    return %arg0, %c0_i32 : i32, i32
  }
}

</mosaic_0001>

<bundles_post_ra>
// kernel: tpu_custom_call.1
= control target key start
LH: loop header
LB: loop body
LE: loop exit
PB: predicated region body
PF: predicated region fallthrough
CT: control target
= control target key end

     0   :  { %8 = vsyncpa [#allocation4], 0  ;;  %s437_s0 = inlined_call_operand.hbm [shape: f32[2,16,256], index: 0, kind: input, shape index: {}]   ;;  %s438_s1 = inlined_call_operand.vmem [shape: f32[16,4], index: 1, kind: input, shape index: {}]   ;;  %s439_s2 = inlined_call_operand.vmem [shape: f32[4,4], index: 2, kind: input, shape index: {}]   ;;  %s440_s3 = inlined_call_operand.hbm [shape: f32[2,4], index: 3, kind: output, shape index: {}]  }
   0x1   :  { %9 = vsyncpa [#allocation5], 0  ;;  %s374_s12 = smov [#allocation3]   ;;  %s326_s16 = scalar_lea.hbm %s437_s0, 1024 }
   0x2   :  { %s15_s13 = sshll.u32 %s374_s12, 4  ;;  %p327_p0 = scmp.ne.s32.totalorder %s437_s0, %s326_s16  ;;  %s16_s13 = int_to_ptr.vmem [resolvable:$true] %s15_s13 }
   0x3   :  { %p330_p1 = scmp.lt.u32.totalorder %s326_s16, %s437_s0 }
   0x5   :  { %p332_p2 = pnand %p330_p1, %p327_p0 }
   0x7   :  { %335 = shalt.err (!%p332_p2)
}
   0x8   :  { %s336_s21 = scalar_lea.vmem %s16_s13, 1024  ;;  %p341_p4 = scmp.lt.s32.totalorder %s16_s13, %s16_s13 }
   0x9   :  { %p337_p3 = scmp.ne.s32.totalorder %s16_s13, %s336_s21  ;;  %p342_p5 = scmp.lt.s32.totalorder %s336_s21, %s336_s21 }
   0xb   :  { %p343_p6 = por %p342_p5, %p341_p4 }
   0xd   :  { %p344_p7 = pnand %p343_p6, %p337_p3 }
   0xf   :  { %347 = shalt.err (!%p344_p7)
}
  0x10   :  { %s375_s22 = smov 256   ;;  %s376_s23 = smov 16  }
  0x11   :  { %21 = dma.hbm_to_vmem [thread:$0]  %s437_s0, 1024, %s16_s13, [#allocation4], %s375_s22, %s375_s22, %s376_s23  }
  0x12   :  { %370 = dma.done.wait [#allocation4], 1024  }
  0x13   :  { %371 = vsyncadd [#allocation4], 4294966272  ;;  %v39_v0 = vld [vmem:[#allocation3 + $0x20] sm:$0xff]  ;;  %v43_v1 = vld [vmem:[#allocation3 + $0x28] sm:$0xff]  ;;  %v377_v15 = vmov 0.0|0.0   ;;  %vm378_vm0 = vmmov 0   ;;  %v86_v17 = vlaneseq }
  0x14   :  { %v37_v2 = vld [vmem:[#allocation3] sm:$0xff]  ;;  %v47_v3 = vadd.f32 %v43_v1, %v39_v0  ;;  %v41_v4 = vld [vmem:[#allocation3 + $0x8] sm:$0xff]  ;;  %v40_v5 = vld [vmem:[#allocation3 + $0x30] sm:$0xff]  ;;  %312 = vmatprep.subr.bf16.mxu0 %v377_v15  ;;  %v379_v16 = vmov 0.0   ;;  %vm97_vm1 = vcmask 130112   ;;  %vm108_vm2 = vcmask 1041409  }
  0x15   :  { %v44_v6 = vld [vmem:[#allocation3 + $0x38] sm:$0xff]  ;;  %v45_v7 = vadd.f32 %v41_v4, %v37_v2  ;;  %v38_v8 = vld [vmem:[#allocation3 + $0x10] sm:$0xff]  ;;  %v80_v12 = vld [vmem:[%s438_s1] sm:$0xff]  ;;  %304 = vmatprep.mubr.msk.f32.mxu0 %vm378_vm0, %v379_v16  ;;  %307 = vmatprep.subr.mxu1 %v379_v16  ;;  %v87_v18 = vand.u32 127, %v86_v17  ;;  %v89_v19 = vshrl.u32 %v86_v17, 7  ;;  %vm110_vm3 = vcmask 130048  }
  0x16   :  { %v42_v9 = vld [vmem:[#allocation3 + $0x18] sm:$0xff]  ;;  %72 = vadd.xlane.f32.xlu1 %v47_v3  ;;  %v48_v10 = vadd.f32 %v44_v6, %v40_v5  ;;  %v81_v13 = vld [vmem:[%s438_s1 + $0x8] sm:$0xff]  ;;  %309 = vmatprep.mubr.msk.f32.mxu1 %vm378_vm0, %v379_v16  ;;  %v184_v38 = vld [vmem:[%s439_s2] sm:$0xf]  ;;  %vm189_vm4 = vcmask 1043456   ;;  %vm185_vm5 = vcmask 31744  }
  0x17   :  { %68 = vadd.xlane.f32.xlu0 %v45_v7  ;;  %v46_v11 = vadd.f32 %v42_v9, %v38_v8  ;;  %v313_v14 = vpack.c.bf16 %v81_v13, %v80_v12  ;;  %v92_v20 = vadd.s32 4294967288, %v87_v18  ;;  %v90_v23 = vsub.s32 %v87_v18, %v89_v19  ;;  %308 = vmatpush3.msk.msra.mxu1 %vm189_vm4, %v184_v38  ;;  %s380_s2 = smov [#allocation6]  }
  0x18   :  { %vm264_vm6 = vcmask 25600   ;;  %s283_s30 = sshll.u32 %s380_s2, 4  ;;  %s284_s30 = int_to_ptr.vmem [resolvable:$true] %s283_s30 }
  0x19   :  { %314 = vmatpush3.bf16.msra.mxu0 %v313_v14  ;;  %v95_v25 = vsub.s32 %v92_v20, %v89_v19  ;;  %s348_s4 = scalar_lea.vmem %s284_s30, 32  ;;  %p353_p9 = scmp.lt.s32.totalorder %s284_s30, %s284_s30 }
  0x1a   :  { %74 = vadd.xlane.f32.xlu1 %v48_v10  ;;  %p349_p8 = scmp.ne.s32.totalorder %s284_s30, %s348_s4  ;;  %p354_p10 = scmp.lt.s32.totalorder %s348_s4, %s348_s4 }
  0x1b   :  { %70 = vadd.xlane.f32.xlu0 %v46_v11 }
  0x1c   :  { %p355_p11 = por %p354_p10, %p353_p9 }
  0x1e   :  { %p356_p12 = pnand %p355_p11, %p349_p8 }
  0xa3   :  { %v73_v21 = vpop.xlane.xlu1 %72 }
  0xa4   :  { %v69_v22 = vpop.xlane.xlu0 %68  ;;  %v78_v24 = vmul.f32 0.00390625, %v73_v21 }
  0xa5   :  { %v76_v26 = vmul.f32 0.00390625, %v69_v22 }
  0xa6   :  { %v102_v31 = vrot.slane %v78_v24, %v90_v23 }
  0xa7   :  { %v75_v27 = vpop.xlane.xlu1 %74  ;;  %v91_v33 = vrot.slane %v76_v26, %v90_v23 }
  0xa8   :  { %v79_v28 = vmul.f32 0.00390625, %v75_v27  ;;  %v71_v29 = vpop.xlane.xlu0 %70 }
  0xa9   :  { %v77_v30 = vmul.f32 0.00390625, %v71_v29 }
  0xaa   :  { %v106_v32 = vrot.slane %v79_v28, %v95_v25 }
  0xab   :  { %v96_v34 = vrot.slane %v77_v30, %v95_v25 }
  0xac   :  { %v107_v35 = vsel %vm97_vm1, %v106_v32, %v102_v31 }
  0xad   :  { %v98_v36 = vsel %vm97_vm1, %v96_v34, %v91_v33 }
  0xae   :  { %v109_v37 = vsel %vm108_vm2, %v107_v35, %v98_v36 }
  0xaf   :  { %305 = vmatmul.mubr.msk.f32.vlgmr.msra.gmra.mrb[0].mxu0 %vm110_vm3, %v109_v37 }
 0x182   :  { %v179_v39 = vpop.f32.mrb[0].mxu0 }
 0x183   :  { %v183_v40 = vmax.f32 %v179_v39, 0.0  ;;  %v306_v41 = vpop.f32.mrb[1].mxu0 }
 0x185   :  { %310 = vmatmul.mubr.msk.f32.vlgmr.msra.gmra.mrb[0].mxu1 %vm185_vm5, %v183_v40 }
 0x258   :  { %v259_v42 = vpop.f32.mrb[0].mxu1 }
 0x259   :  { %v263_v43 = vmul.f32 0.033333335, %v259_v42  ;;  %v311_v44 = vpop.f32.mrb[1].mxu1 }
 0x25b   :  { %v265_v45 = vsel %vm264_vm6, %v263_v43, -inf }
 0x25c   :  { %266 = vmax.xlane.f32.xlu0 %v265_v45 }
 0x2e9   :  { %v267_v46 = vpop.xlane.xlu0 %266 }
 0x2ea   :  { %v268_v47 = vsub.f32 %v263_v43, %v267_v46 }
 0x2ec   :  { %v269_v48 = vmul.f32 1.442695, %v268_v47 }
 0x2ee   :  { %322 = vpow2.f32 %v269_v48 }
 0x2f8   :  { %v323_v49 = vpop.eup %322 }
 0x2f9   :  { %v271_v50 = vsel %vm264_vm6, %v323_v49, 0.0 }
 0x2fa   :  { %272 = vadd.xlane.f32.xlu1 %v271_v50 }
 0x387   :  { %v273_v51 = vpop.xlane.xlu1 %272 }
 0x388   :  { %324 = vrcp.f32 %v273_v51 }
 0x392   :  { %v325_v52 = vpop.eup %324 }
 0x393   :  { %v275_v53 = vmul.f32 %v325_v52, %v323_v49 }
 0x395   :  { %276 = vst.msk [vmem:[#allocation6] sm:$0x3] %vm264_vm6, %v275_v53 }
 0x396   :  { %359 = shalt.err (!%p356_p12)
}
 0x397   :  { %s360_s7 = scalar_lea.hbm %s440_s3, 32 }
 0x398   :  { %p361_p13 = scmp.ne.s32.totalorder %s440_s3, %s360_s7  ;;  %p364_p0 = scmp.lt.u32.totalorder %s360_s7, %s440_s3 }
 0x39a   :  { %p366_p1 = pnand %p364_p0, %p361_p13 }
 0x39c   :  { %369 = shalt.err (!%p366_p1)
}
 0x39d   :  { %286 = dma.vmem_to_hbm [thread:$0]  %s284_s30, 32, %s440_s3, [#allocation5]  }
 0x39e   :  { %372 = dma.done.wait [#allocation5], 32  }
 0x39f   :  { %373 = vsyncadd [#allocation5], 4294967264 }
 0x3a0   :  { %290 = vsyncpa [#allocation4], 1 }
 0x3a1   :  { %291 = vsyncpa [#allocation5], 1 }

</bundles_post_ra>
